<compile_context>
chip_gen: v5e
topology: v5e:2x2
jax: 0.10.0
libtpu: 0.0.40
codegen_flags: <defaults>
</compile_context>

<pallas_src>
import functools
import math

import numpy as np
import jax
import jax.numpy as jnp
from jax import lax
from jax.experimental import pallas as pl
from jax.experimental.pallas import tpu as pltpu


# ----------------------------------------------------------------------------
# Kernel: accumulate g = y_flat @ A over P tiles, then per-block path-length norms
# ----------------------------------------------------------------------------
def _plp_norm_kernel(y_ref, a_ref, sel_ref, norm_ref, acc_ref, *, inv_image_size):
    p = pl.program_id(0)

    @pl.when(p == 0)
    def _():
        acc_ref[...] = jnp.zeros_like(acc_ref)

    # bf16 x bf16 -> f32-accumulated MXU pass (inputs are bf16 at rest; no casts).
    # Partial analytic grads are accumulated UN-squared in f32 across P tiles.
    acc_ref[...] += jnp.dot(y_ref[...], a_ref[...],
                            preferred_element_type=jnp.float32)      # (B, K*D) f32

    @pl.when(p == pl.num_programs(0) - 1)
    def _():
        g = acc_ref[...]                                              # (B, K*D) f32
        gsq = g * g
        # Per-block sum over each d_latent lane chunk via a constant 0/1 selection
        # matmul (K*D, K): lane-dense, no reshape/relayout; runs once, off hot path.
        sum_d = jnp.dot(gsq, sel_ref[...],
                        preferred_element_type=jnp.float32)           # (B, K)
        # norm[k] = sqrt( mean_b sum_d grads^2 ), grads = g / sqrt(H*W).
        norm_ref[...] = jnp.sqrt(
            jnp.mean(sum_d, axis=0, keepdims=True) * inv_image_size)  # (1, K)


def _choose_tp(p_total, kd, b, budget_bytes=16 << 20):
    """Largest 128-multiple divisor of P whose double-buffered bf16 tiles fit budget.

    Budget default (16 MiB of input buffers) is conservative enough for v7x's 64 MiB
    VMEM while still amortizing the ~0.35 us per-grid-step overhead.
    """
    for cand in (8192, 4096, 2048, 1024, 512, 256, 128):
        if p_total % cand == 0 and 2 * (cand * kd * 2 + b * cand * 2) <= budget_bytes:
            return cand
    return p_total  # tiny P: single block


# ----------------------------------------------------------------------------
# Functional PathLengthPenalty.forward
# ----------------------------------------------------------------------------
@functools.partial(jax.jit, static_argnames=("beta", "tp"))
def path_length_penalty(w, x, y, a_pkd, steps, exp_sum_a, *, beta, tp=None):
    """Returns (loss, new_exp_sum_a, new_steps).

    w:      (K, B, D)    latent input of the synthetic linear generator x = G(w).
    x:      (B, C, H, W) generator output (only H, W -> image_size are used; the
                         (x*y).sum() autograd root is dead code downstream).
    y:      (B, C, H, W) the torch.randn(x.shape) noise (explicit; JAX is functional).
    a_pkd:  (C*H*W, K*D) generator weights in kernel-friendly layout
                         (a_pkd[p, k*D + d] multiplies w[k, b, d] into x[b, p]);
                         store bf16 at rest.
    """
    K, B, D = w.shape
    _, C, H, W = x.shape
    P = C * H * W
    KD = K * D
    assert a_pkd.shape == (P, KD)

    # bf16 at rest in HBM (no-op casts if the caller already stores bf16).
    y_flat = y.reshape(B, P).astype(jnp.bfloat16)
    a_bf16 = a_pkd.astype(jnp.bfloat16)

    if tp is None:
        tp = _choose_tp(P, KD, B)
    assert P % tp == 0 and (tp % 128 == 0 or tp == P)
    grid = (P // tp,)

    # Constant 0/1 block-sum selection matrix (K*D, K): column k selects lanes
    # [k*D, (k+1)*D). Built once at trace time; fetched once (constant index_map).
    sel = jnp.asarray(np.kron(np.eye(K, dtype=np.float32),
                              np.ones((D, 1), dtype=np.float32)))

    # VMEM need: double-buffered bf16 input tiles + f32 accumulator (+ tiny sel/out).
    tile_bytes = 2 * (tp * KD * 2 + B * tp * 2) + B * KD * 4 + KD * K * 4
    vmem_limit = None if tile_bytes < (12 << 20) else min(2 * tile_bytes, 48 << 20)

    kernel = functools.partial(_plp_norm_kernel,
                               inv_image_size=1.0 / float(H * W))

    norm = pl.pallas_call(
        kernel,
        grid_spec=pltpu.PrefetchScalarGridSpec(
            num_scalar_prefetch=0,
            grid=grid,
            in_specs=[
                pl.BlockSpec((B, tp), lambda p: (0, p)),    # y_flat (bf16)
                pl.BlockSpec((tp, KD), lambda p: (p, 0)),   # a_pkd  (bf16)
                pl.BlockSpec((KD, K), lambda p: (0, 0)),    # sel    (f32, resident)
            ],
            out_specs=pl.BlockSpec((1, K), lambda p: (0, 0)),
            scratch_shapes=[pltpu.VMEM((B, KD), jnp.float32)],  # un-squared g acc
        ),
        out_shape=jax.ShapeDtypeStruct((1, K), jnp.float32),
        compiler_params=pltpu.CompilerParams(
            dimension_semantics=("arbitrary",),          # P is a contraction axis
            vmem_limit_bytes=vmem_limit,
        ),
        cost_estimate=pl.CostEstimate(
            flops=2 * B * P * KD + 2 * B * KD * K,
            transcendentals=0,
            bytes_accessed=P * KD * 2 + B * P * 2 + KD * K * 4 + K * 4,
        ),
    )(y_flat, a_bf16, sel)

    norm = norm[0]                                       # (K,)

    # Scalar EMA / loss epilogue (K + 3 scalars) in plain JAX, per the perf review.
    steps = jnp.asarray(steps, jnp.float32)
    exp_sum_a = jnp.asarray(exp_sum_a, jnp.float32)
    denom = 1.0 - beta ** steps
    safe_denom = jnp.where(steps > 0.0, denom, 1.0)      # guard 0/0 at steps == 0
    a = exp_sum_a / safe_denom
    loss = jnp.where(steps > 0.0, jnp.mean((norm - a) ** 2), 0.0)
    mean_norm = jnp.mean(norm)
    new_exp_sum_a = beta * exp_sum_a + (1.0 - beta) * mean_norm
    # steps kept as float32 for torch parity (nn.Parameter(0.0) + 1.0 each call).
    new_steps = steps + 1.0
    return loss, new_exp_sum_a, new_steps


# ----------------------------------------------------------------------------
# Pure-JAX reference (jax.grad through the same synthetic linear generator),
# run on f32 upcasts of the SAME bf16-at-rest tensors the kernel consumes.
# ----------------------------------------------------------------------------
def reference(w, x, y_bf16, a_bf16, steps, exp_sum_a, beta):
    K, B, D = w.shape
    _, C, H, W = x.shape
    yf = y_bf16.astype(jnp.float32).reshape(B, -1)
    af = a_bf16.astype(jnp.float32)
    inv_sqrt = 1.0 / math.sqrt(H * W)

    def out_fn(w_):
        w_flat = jnp.transpose(w_, (1, 0, 2)).reshape(B, K * D)
        xf = jnp.dot(w_flat, af.T, precision=lax.Precision.HIGHEST)
        return jnp.sum(xf * yf) * inv_sqrt

    grads = jax.grad(out_fn)(w)                                       # (K, B, D)
    norm = jnp.sqrt(jnp.mean(jnp.sum(grads ** 2, axis=2), axis=1))    # (K,)
    a = exp_sum_a / (1.0 - beta ** steps)
    loss = jnp.where(steps > 0.0, jnp.mean((norm - a) ** 2), 0.0)
    mean = jnp.mean(norm)
    return loss, beta * exp_sum_a + (1.0 - beta) * mean, steps + 1.0


if __name__ == "__main__":
    key = jax.random.PRNGKey(0)
    B, C, H, W = 2, 4, 16, 16        # x: NCHW
    K, D = 4, 32                     # w: (n_gen_blocks, batch, d_latent)
    P = C * H * W
    beta = 0.99

    k1, k2, k3, k4 = jax.random.split(key, 4)
    w = jax.random.normal(k1, (K, B, D), jnp.float32)
    # Generator weights stored bf16 AT REST in the kernel-friendly (P, K*D) layout.
    a_pkd = (jax.random.normal(k2, (P, K * D), jnp.float32) * 0.05).astype(jnp.bfloat16)
    # torch.randn analogue for the two forward calls; also bf16 at rest.
    y1 = jax.random.normal(k3, (B, C, H, W), jnp.float32).astype(jnp.bfloat16)
    y2 = jax.random.normal(k4, (B, C, H, W), jnp.float32).astype(jnp.bfloat16)

    # x = G(w): synthetic differentiable linear generator (plain-JAX glue; only x.shape is used).
    w_flat = jnp.transpose(w, (1, 0, 2)).reshape(B, K * D)
    x = jnp.dot(w_flat, a_pkd.astype(jnp.float32).T).reshape(B, C, H, W)

    steps = jnp.float32(0.0)
    exp_sum_a = jnp.float32(0.0)

    # tp=256 -> 4-step P grid, exercising the accumulator (pl.when init/finalize) path.
    # step 1: steps == 0 branch -> loss == 0, state update
    loss0, esa1, steps1 = path_length_penalty(w, x, y1, a_pkd, steps, exp_sum_a,
                                              beta=beta, tp=256)
    # step 2: steps > 0 branch -> nonzero loss
    loss1, esa2, steps2 = path_length_penalty(w, x, y2, a_pkd, steps1, esa1,
                                              beta=beta, tp=256)
    jax.block_until_ready((loss0, loss1, esa2, steps2))

    # reference check (same bf16-valued inputs; difference is only MXU accumulation)
    r_loss0, r_esa1, r_steps1 = reference(w, x, y1, a_pkd, steps, exp_sum_a, beta)
    r_loss1, r_esa2, r_steps2 = reference(w, x, y2, a_pkd, r_steps1, r_esa1, beta)

    np.testing.assert_allclose(np.asarray(loss0), np.asarray(r_loss0), rtol=1e-2, atol=1e-4)
    np.testing.assert_allclose(np.asarray(loss1), np.asarray(r_loss1), rtol=1e-2, atol=1e-4)
    np.testing.assert_allclose(np.asarray(esa2), np.asarray(r_esa2), rtol=1e-2, atol=1e-4)
    np.testing.assert_allclose(np.asarray(steps2), np.asarray(r_steps2), rtol=0, atol=0)

    print("KERNEL_OK")
</pallas_src>

<mosaic_0001>
module attributes {stable_mosaic.version = 11 : i64} {
  func.func @_plp_norm_kernel(%arg0: i32, %arg1: memref<2x256xbf16, #tpu.memory_space<vmem>>, %arg2: memref<256x128xbf16, #tpu.memory_space<vmem>>, %arg3: memref<128x4xf32, #tpu.memory_space<vmem>>, %arg4: memref<1x4xf32, #tpu.memory_space<vmem>>, %arg5: memref<2x128xf32, #tpu.memory_space<vmem>>) attributes {dimension_semantics = [#tpu.dimension_semantics<arbitrary>], iteration_bounds = array<i64: 4>, scalar_prefetch = 0 : i64, scratch_operands = 1 : i64, tpu.core_type = #tpu.core_type<tc>, window_params = [{transform_indices = @transform_0, window_bounds = array<i64: 2, 256>}, {transform_indices = @transform_1, window_bounds = array<i64: 256, 128>}, {pipeline_mode = #tpu.pipeline_mode<synchronous>, transform_indices = @transform_2, window_bounds = array<i64: 128, 4>}, {pipeline_mode = #tpu.pipeline_mode<synchronous>, transform_indices = @transform_3, window_bounds = array<i64: 1, 4>}]} {
    %c0_i32 = arith.constant 0 : i32
    %0 = arith.cmpi eq, %arg0, %c0_i32 : i32
    %1 = arith.extui %0 : i1 to i32
    %c0_i32_0 = arith.constant 0 : i32
    %2 = arith.cmpi ne, %1, %c0_i32_0 : i32
    scf.if %2 {
      %cst_9 = arith.constant 0.000000e+00 : f32
      %12 = vector.broadcast %cst_9 : f32 to vector<2x128xf32>
      %c0_10 = arith.constant 0 : index
      %c0_11 = arith.constant 0 : index
      %13 = vector.load %arg5[%c0_10, %c0_11] : memref<2x128xf32, #tpu.memory_space<vmem>>, vector<2x128xf32>
      tpu.vector_store %arg5[%c0_10, %c0_11], %12 {strides = array<i32>} : memref<2x128xf32, #tpu.memory_space<vmem>>, vector<2x128xf32>,
    } else {
    }
    %c0 = arith.constant 0 : index
    %c0_1 = arith.constant 0 : index
    %3 = vector.load %arg5[%c0, %c0_1] : memref<2x128xf32, #tpu.memory_space<vmem>>, vector<2x128xf32>
    %c0_2 = arith.constant 0 : index
    %c0_3 = arith.constant 0 : index
    %4 = vector.load %arg1[%c0_2, %c0_3] : memref<2x256xbf16, #tpu.memory_space<vmem>>, vector<2x256xbf16>
    %c0_4 = arith.constant 0 : index
    %c0_5 = arith.constant 0 : index
    %5 = vector.load %arg2[%c0_4, %c0_5] : memref<256x128xbf16, #tpu.memory_space<vmem>>, vector<256x128xbf16>
    %cst = arith.constant dense<0.000000e+00> : vector<2x128xf32>
    %6 = tpu.matmul %4, %5, %cst {dimension_numbers = #tpu.dot_dimension_numbers<[1], [0], [0], [1], [0, 0, 1, 1], [], []>} : vector<2x256xbf16>, vector<256x128xbf16>, vector<2x128xf32> -> vector<2x128xf32>
    %7 = arith.addf %3, %6 : vector<2x128xf32>
    %c0_6 = arith.constant 0 : index
    %c0_7 = arith.constant 0 : index
    %8 = vector.load %arg5[%c0_6, %c0_7] : memref<2x128xf32, #tpu.memory_space<vmem>>, vector<2x128xf32>
    tpu.vector_store %arg5[%c0_6, %c0_7], %7 {strides = array<i32>} : memref<2x128xf32, #tpu.memory_space<vmem>>, vector<2x128xf32>,
    %c3_i32 = arith.constant 3 : i32
    %9 = arith.cmpi eq, %arg0, %c3_i32 : i32
    %10 = arith.extui %9 : i1 to i32
    %c0_i32_8 = arith.constant 0 : i32
    %11 = arith.cmpi ne, %10, %c0_i32_8 : i32
    scf.if %11 {
      %c0_9 = arith.constant 0 : index
      %c0_10 = arith.constant 0 : index
      %12 = vector.load %arg5[%c0_9, %c0_10] : memref<2x128xf32, #tpu.memory_space<vmem>>, vector<2x128xf32>
      %13 = arith.mulf %12, %12 : vector<2x128xf32>
      %c0_11 = arith.constant 0 : index
      %c0_12 = arith.constant 0 : index
      %14 = vector.load %arg3[%c0_11, %c0_12] : memref<128x4xf32, #tpu.memory_space<vmem>>, vector<128x4xf32>
      %cst_13 = arith.constant dense<0.000000e+00> : vector<2x4xf32>
      %15 = tpu.matmul %13, %14, %cst_13 {dimension_numbers = #tpu.dot_dimension_numbers<[1], [0], [0], [1], [0, 0, 1, 1], [], []>} : vector<2x128xf32>, vector<128x4xf32>, vector<2x4xf32> -> vector<2x4xf32>
      %cst_14 = arith.constant dense<0.000000e+00> : vector<4xf32>
      %16 = vector.multi_reduction <add>, %15, %cst_14 [0] : vector<2x4xf32> to vector<4xf32>
      %17 = vector.shape_cast %16 : vector<4xf32> to vector<1x4xf32>
      %cst_15 = arith.constant 2.000000e+00 : f32
      %18 = vector.broadcast %cst_15 : f32 to vector<1x4xf32>
      %19 = arith.divf %17, %18 : vector<1x4xf32>
      %cst_16 = arith.constant 3.906250e-03 : f32
      %20 = vector.broadcast %cst_16 : f32 to vector<1x4xf32>
      %21 = arith.mulf %19, %20 : vector<1x4xf32>
      %22 = math.sqrt %21 : vector<1x4xf32>
      %c0_17 = arith.constant 0 : index
      %c0_18 = arith.constant 0 : index
      %23 = vector.load %arg4[%c0_17, %c0_18] : memref<1x4xf32, #tpu.memory_space<vmem>>, vector<1x4xf32>
      tpu.vector_store %arg4[%c0_17, %c0_18], %22 {strides = array<i32>} : memref<1x4xf32, #tpu.memory_space<vmem>>, vector<1x4xf32>,
    } else {
    }
    return
  }
  func.func @transform_0(%arg0: i32) -> (i32, i32) {
    %c0_i32 = arith.constant 0 : i32
    %c0_i32_0 = arith.constant 0 : i32
    return %c0_i32, %arg0 : i32, i32
  }
  func.func @transform_1(%arg0: i32) -> (i32, i32) {
    %c0_i32 = arith.constant 0 : i32
    %c0_i32_0 = arith.constant 0 : i32
    return %arg0, %c0_i32 : i32, i32
  }
  func.func @transform_2(%arg0: i32) -> (i32, i32) {
    %c0_i32 = arith.constant 0 : i32
    %c0_i32_0 = arith.constant 0 : i32
    %c0_i32_1 = arith.constant 0 : i32
    return %c0_i32, %c0_i32_0 : i32, i32
  }
  func.func @transform_3(%arg0: i32) -> (i32, i32) {
    %c0_i32 = arith.constant 0 : i32
    %c0_i32_0 = arith.constant 0 : i32
    %c0_i32_1 = arith.constant 0 : i32
    return %c0_i32, %c0_i32_0 : i32, i32
  }
}

</mosaic_0001>

<bundles_post_ra>
// kernel: path_length_penalty.1
= control target key start
LH: loop header
LB: loop body
LE: loop exit
PB: predicated region body
PF: predicated region fallthrough
CT: control target
= control target key end

     0   :  { %8 = vsyncpa [#allocation4], 0  ;;  %s925_s0 = inlined_call_operand.vmem [shape: bf16[2,1024], index: 0, kind: input, shape index: {}]   ;;  %s926_s1 = inlined_call_operand.hbm [shape: bf16[1024,128], index: 1, kind: input, shape index: {}]   ;;  %s927_s2 = inlined_call_operand.hbm [shape: f32[128,4], index: 2, kind: input, shape index: {}]   ;;  %s928_s3 = inlined_call_operand.vmem [shape: f32[1,4], index: 3, kind: output, shape index: {}]  }
   0x1   :  { %10 = vsyncpa [#allocation4 + $0x1], 0 }
   0x2   :  { %11 = vsyncpa [#allocation6], 0  ;;  %s798_s12 = smov 0   ;;  %s800_s13 = smov 0  }
   0x3   :  { %s802_s14 = smov 0   ;;  %s804_s15 = smov 0  }
   0x4 LB: > { %s817_s16 = sadd.s32 4294967295, %s769_s15   ;;  %p63_p0 = scmp.ne.s32.totalorder %s761_s13, %s757_s12  ;;  %s769_s15 = sphi %s804_s15, %s935_s15   ;;  %s765_s14 = sphi %s802_s14, %s934_s14   ;;  %s761_s13 = sphi %s800_s13, %s933_s13   ;;  %s757_s12 = sphi %s798_s12, %s932_s12  }
   0x5   : > { %p64_p1 = scmp.eq.s32.totalorder %s817_s16, 0  ;;  %p516_p2 = scmp.ge.s32.totalorder %s769_s15, 1 }
   0x6   : > { %p116_p3 = scmp.lt.s32.totalorder %s769_s15, 5  ;;  %p517_p4 = scmp.ne.s32.totalorder %s817_s16, 0 }
   0x7   : > { %p826_p5 = por %p64_p1, %p63_p0  ;;  %s127_s20 = sshll.u32 %s927_s2, 4  ;;  %s128_s20 = int_to_ptr.hbm [resolvable:$true] %s127_s20 }
   0x8   : > { %p833_p6 = pnand %p516_p2, %p116_p3  ;;  %s771_s22 = smov [#allocation5]  }
   0x9   : > { %s129_s23 = sshll.u32 %s771_s22, 4  ;;  %s842_s24 = sadd.s32 1, %s769_s15   ;;  %s130_s23 = int_to_ptr.vmem [resolvable:$true] %s129_s23 }
   0xa   : > { %p617_p7 = pneg %p833_p6  ;;  %s772_s25 = smov 128  }
   0xb   : > { %s773_s26 = smov 8   ;;  %s47_s27 = ssub.s32 %s769_s15, %s842_s24 }
   0xc   : > { %p618_p8 = pnand %p617_p7, %p64_p1  ;;  %s50_s28 = sadd.s32 1, %s765_s14 }
   0xd   : > { %p48_p9 = scmp.eq.s32.totalorder %s47_s27, 0  ;;  %p57_p10 = scmp.ne.s32.totalorder %s765_s14, %s761_s13 }
   0xe   : > { %620 = dma.hbm_to_vmem [thread:$0]  (!%p618_p8), %s128_s20, 2048, %s130_s23, [#allocation6], %s772_s25, %s772_s25, %s773_s26  }
   0xf   : > { %p58_p11 = scmp.eq.s32.totalorder %s769_s15, 0  ;;  %p626_p12 = scmp.lt.s32.totalorder %s769_s15, 4 }
  0x10   : > { %s852_s29 = scalar_select %p48_p9, %s765_s14, %s50_s28  }
  0x11   : > { %p59_p13 = por %p58_p11, %p57_p10  ;;  %s151_s30 = sand.u32 1, %s765_s14  }
  0x12   : > { %s519_s4 = sshll.u32 %s151_s30, 7  ;;  %s594_s5 = sshll.u32 %s769_s15, 7 }
  0x13   : > { %s160_s8 = scalar_lea.hbm %s926_s1, %s594_s5  ;;  %s155_s9 = scalar_lea.vmem [#allocation3], %s519_s4 }
  0x14   : > { %s163_s10 = sshll.u32 %s155_s9, 4  ;;  %s161_s11 = sshll.u32 %s160_s8, 4  ;;  %s164_s10 = int_to_ptr.vmem [resolvable:$true] %s163_s10  ;;  %s162_s11 = int_to_ptr.hbm [resolvable:$true] %s161_s11 }
  0x15   : > { %p859_p0 = pnand %p626_p12, %p59_p13  ;;  %s152_s18 = scalar_lea.sflag [#allocation4], %s151_s30 }
  0x16   : > { %s701_s19 = sshra.s32 %s162_s11, 4  ;;  %s708_s23 = scalar_lea.hbm %s926_s1, 512  ;;  %s702_s19 = int_to_ptr.hbm [resolvable:$true] %s701_s19 }
  0x17   : > { %s703_s20 = scalar_lea.hbm %s702_s19, 128  ;;  %p705_p3 = pneg %p859_p0 }
  0x18   : > { %p704_p2 = scmp.ne.s32.totalorder %s702_s19, %s703_s20  ;;  %p709_p9 = scmp.lt.s32.totalorder %s702_s19, %s926_s1 }
  0x19   : > { %p710_p10 = scmp.lt.s32.totalorder %s708_s23, %s703_s20 }
  0x1a   : > { %p706_p7 = pnand %p705_p3, %p704_p2 }
  0x1b   : > { %p711_p11 = por %p710_p10, %p709_p9 }
  0x1c   : > { %p707_p8 = pneg %p706_p7 }
  0x1e   : > { %p712_p12 = pnand %p711_p11, %p707_p8 }
  0x20   : > { %715 = shalt.err (!%p712_p12)
}
  0x21   : > { %s774_s27 = smov 64   ;;  %s775_s28 = smov 4  }
  0x22   : > { %624 = dma.hbm_to_vmem [thread:$0]  (!%p859_p0), %s162_s11, 2048, %s164_s10, %s152_s18, %s774_s27, %s774_s27, %s775_s28  }
  0x23   : > { %175 = sbr.rel (%p833_p6) target bundleno = 414 (0x19e), region = 32  ;;  %s177_s30 = sand.u32 (!%p833_p6), 1, %s761_s13  }
  0x24   : > { %s523_s4 = sshll.u32 (!%p833_p6), %s177_s30, 7  ;;  %s178_s5 = scalar_lea.sflag (!%p833_p6), [#allocation4], %s177_s30 }
  0x25   : > { %s876_s6 = scalar_lea.vmem (!%p833_p6), [#allocation3], %s523_s4 }
  0x28   : > { %748 = dma.done.wait (%p826_p5), %s178_s5, 2048  }
  0x29   : > { %750 = vsyncadd (%p826_p5), %s178_s5, 4294965248 }
  0x2a   : > { %752 = dma.done.wait (%p64_p1), [#allocation6], 2048  }
  0x2b   : > { %754 = vsyncadd (%p64_p1), [#allocation6], 4294965248  ;;  %s525_s21 = sshll.u32 %s817_s16, 1  ;;  %218 = sbr.rel (%p517_p4) target bundleno = 50 (0x32), region = 44 }
  0x2c   : > { %p210_p6 = scmp.lt.s32.totalorder %s525_s21, 7 }
  0x2e   : > { %s937_s21 = smov (!%p210_p6, %s525_s21), 7 }
  0x2f   : > { %s212_s9 = scalar_lea.vmem %s925_s0, %s937_s21 }
  0x30   : > { %v776_v0 = vmov 0.0  }
  0x31   : > { %219 = vst [vmem:[#allocation2] sm:$0x3] %v776_v0 }
  0x32 PF: > { %v602_v1 = vld [vmem:[%s876_s6 + $0x38] sm:$0xff]  ;;  %v601_v3 = vld [vmem:[%s876_s6 + $0x30] sm:$0xff]  ;;  %v600_v6 = vld [vmem:[%s876_s6 + $0x28] sm:$0xff]  ;;  %p591_p1 = scmp.ne.s32.totalorder %s817_s16, 3 }
  0x33   : > { %v610_v2 = vld [vmem:[%s876_s6 + $0x78] sm:$0xff]  ;;  %356 = vmatpush.bf16.msra.mxu0 %v602_v1  ;;  %v609_v4 = vld [vmem:[%s876_s6 + $0x70] sm:$0xff]  ;;  %v608_v7 = vld [vmem:[%s876_s6 + $0x68] sm:$0xff] }
  0x34   : > { %369 = vmatpush.bf16.msra.mxu1 %v610_v2  ;;  %v221_v5 = vld [vmem:[%s212_s9] sm:$0x3]  ;;  %v599_v8 = vld [vmem:[%s876_s6 + $0x20] sm:$0xff]  ;;  %v598_v10 = vld [vmem:[%s876_s6 + $0x18] sm:$0xff] }
  0x35   : > { %255 = vst [vmem:[#allocation1] ss:$9 sm:$0xff] %v221_v5  ;;  %v607_v9 = vld [vmem:[%s876_s6 + $0x60] sm:$0xff]  ;;  %v606_v11 = vld [vmem:[%s876_s6 + $0x58] sm:$0xff]  ;;  %v597_v12 = vld [vmem:[%s876_s6 + $0x10] sm:$0xff] }
  0x36   : > { %v605_v13 = vld [vmem:[%s876_s6 + $0x50] sm:$0xff]  ;;  %v596_v14 = vld [vmem:[%s876_s6 + $0x8] sm:$0xff]  ;;  %v595_v16 = vld [vmem:[%s876_s6] sm:$0xff] }
  0x37   : > { %357 = vmatpush.bf16.msra.mxu0 %v601_v3  ;;  %v604_v15 = vld [vmem:[%s876_s6 + $0x48] sm:$0xff]  ;;  %v603_v17 = vld [vmem:[%s876_s6 + $0x40] sm:$0xff] }
  0x38   : > { %370 = vmatpush.bf16.msra.mxu1 %v609_v4  ;;  %v220_v21 = vld [vmem:[#allocation2] sm:$0x3] }
  0x3b   : > { %358 = vmatpush.bf16.msra.mxu0 %v600_v6 }
  0x3c   : > { %371 = vmatpush.bf16.msra.mxu1 %v608_v7  ;;  %v256_v18 = vld [vmem:[#allocation1] sm:$0xff]  ;;  %v257_v19 = vld [vmem:[#allocation1 + $0x9] sm:$0xff] }
  0x3f   : > { %359 = vmatpush.bf16.msra.mxu0 %v599_v8 }
  0x40   : > { %372 = vmatpush.bf16.msra.mxu1 %v607_v9 }
  0x43   : > { %360 = vmatpush.bf16.msra.mxu0 %v598_v10 }
  0x44   : > { %373 = vmatpush.bf16.msra.mxu1 %v606_v11 }
  0x47   : > { %361 = vmatpush.bf16.msra.mxu0 %v597_v12 }
  0x48   : > { %374 = vmatpush.bf16.msra.mxu1 %v605_v13 }
  0x4b   : > { %362 = vmatpush.bf16.msra.mxu0 %v596_v14 }
  0x4c   : > { %375 = vmatpush.bf16.msra.mxu1 %v604_v15 }
  0x4f   : > { %363 = vmatpush.bf16.msra.mxu0 %v595_v16 }
  0x50   : > { %376 = vmatpush.bf16.msra.mxu1 %v603_v17 }
  0x52   : > { %364 = vmatmul.bf16.vlgmr.msra.gmra.mxu0 %v256_v18 }
  0x53   : > { %377 = vmatmul.bf16.vlgmr.msra.gmra.mxu1 %v257_v19 }
  0xcf   : > { %v365_v20 = vpop.f32.mrf.mxu0 }
  0xd0   : > { %v378_v22 = vpop.f32.mrf.mxu1 }
  0xd1   : > { %v379_v23 = vadd.f32 %v378_v22, %v365_v20 }
  0xd3   : > { %v382_v24 = vadd.f32 %v379_v23, %v220_v21 }
  0xd4   : > { %387 = sbr.rel (%p591_p1) target bundleno = 414 (0x19e), region = 48 }
  0xd5   : > { %383 = vst [vmem:[#allocation2] sm:$0x3] %v382_v24 }
  0xd7   : > { %v367_v25 = vpop.f32.mrf.mxu0 }
  0xd8   : > { %v380_v26 = vpop.f32.mrf.mxu1 }
  0xd9   : > { %v405_v27 = vld [vmem:[#allocation5 + $0x78] sm:$0xff]  ;;  %v404_v28 = vld [vmem:[#allocation5 + $0x70] sm:$0xff]  ;;  %v403_v29 = vld [vmem:[#allocation5 + $0x68] sm:$0xff]  ;;  %v777_v45 = vmov 2.0   ;;  %vm426_vm0 = vcmask 25600   ;;  %vm455_vm3 = vcmask 24576  }
  0xda   : > { %406 = vmatpush.msra.mxu0 %v405_v27  ;;  %v402_v30 = vld [vmem:[#allocation5 + $0x60] sm:$0xff]  ;;  %v401_v31 = vld [vmem:[#allocation5 + $0x58] sm:$0xff]  ;;  %v400_v32 = vld [vmem:[#allocation5 + $0x50] sm:$0xff]  ;;  %667 = vrcp.f32 %v777_v45 }
  0xdb   : > { %v399_v33 = vld [vmem:[#allocation5 + $0x48] sm:$0xff]  ;;  %v398_v34 = vld [vmem:[#allocation5 + $0x40] sm:$0xff]  ;;  %v397_v35 = vld [vmem:[#allocation5 + $0x38] sm:$0xff] }
  0xdc   : > { %407 = vmatpush.msra.mxu0 %v404_v28  ;;  %v396_v36 = vld [vmem:[#allocation5 + $0x30] sm:$0xff]  ;;  %v395_v37 = vld [vmem:[#allocation5 + $0x28] sm:$0xff]  ;;  %v394_v38 = vld [vmem:[#allocation5 + $0x20] sm:$0xff] }
  0xdd   : > { %v393_v39 = vld [vmem:[#allocation5 + $0x18] sm:$0xff]  ;;  %v392_v40 = vld [vmem:[#allocation5 + $0x10] sm:$0xff]  ;;  %v391_v42 = vld [vmem:[#allocation5 + $0x8] sm:$0xff] }
  0xde   : > { %408 = vmatpush.msra.mxu0 %v403_v29  ;;  %v388_v41 = vld [vmem:[#allocation2] sm:$0x3]  ;;  %v390_v43 = vld [vmem:[#allocation5] sm:$0xff] }
  0xdf   : > { %v389_v44 = vmul.f32 %v388_v41, %v388_v41 }
  0xe0   : > { %409 = vmatpush.msra.mxu0 %v402_v30  ;;  %v668_v46 = vpop.eup %667 }
  0xe1   : > { %v435_v47 = vmul.f32 2.0, %v668_v46  ;;  %vm439_vm1 = vweird.f32 %v668_v46 }
  0xe2   : > { %410 = vmatpush.msra.mxu0 %v401_v31 }
  0xe3   : > { %v436_v48 = vsub.f32 1.0, %v435_v47 }
  0xe4   : > { %411 = vmatpush.msra.mxu0 %v400_v32 }
  0xe5   : > { %v437_v52 = vmul.f32 %v668_v46, %v436_v48 }
  0xe6   : > { %412 = vmatpush.msra.mxu0 %v399_v33 }
  0xe7   : > { %v438_v55 = vadd.f32 %v668_v46, %v437_v52 }
  0xe8   : > { %413 = vmatpush.msra.mxu0 %v398_v34 }
  0xe9   : > { %v440_v58 = vsel %vm439_vm1, %v668_v46, %v438_v55 }
  0xea   : > { %414 = vmatpush.msra.mxu0 %v397_v35 }
  0xec   : > { %415 = vmatpush.msra.mxu0 %v396_v36 }
  0xee   : > { %416 = vmatpush.msra.mxu0 %v395_v37 }
  0xf0   : > { %417 = vmatpush.msra.mxu0 %v394_v38 }
  0xf2   : > { %418 = vmatpush.msra.mxu0 %v393_v39 }
  0xf4   : > { %419 = vmatpush.msra.mxu0 %v392_v40 }
  0xf6   : > { %420 = vmatpush.msra.mxu0 %v391_v42 }
  0xf8   : > { %421 = vmatpush.msra.mxu0 %v390_v43 }
  0xf9   : > { %422 = vmatmul.f32.vlgmr.msra.gmra.mxu0 %v389_v44 }
 0x176   : > { %v423_v49 = vpop.f32.mrf.mxu0 }
 0x177   : > { %v427_v50 = vsel %vm426_vm0, %v423_v49, 0.0 }
 0x178   : > { %v428_v51 = vrot.slane %v427_v50, 4 }
 0x17a   : > { %v429_v53 = vadd.f32 %v428_v51, %v427_v50 }
 0x17c   : > { %v430_v54 = vrot.slane %v429_v53, 2 }
 0x17e   : > { %v431_v56 = vadd.f32 %v430_v54, %v429_v53 }
 0x180   : > { %v432_v57 = vrot.slane %v431_v56, 1 }
 0x182   : > { %v433_v59 = vadd.f32 %v432_v57, %v431_v56 }
 0x184   : > { %v441_v60 = vmul.f32 %v440_v58, %v433_v59 }
 0x186   : > { %v442_v61 = vmul.f32 0.00390625, %v441_v60 }
 0x188   : > { %669 = vrsqrt.f32 %v442_v61  ;;  %vm450_vm2 = vcmp.eq.f32.partialorder %v442_v61, inf  ;;  %v453_v5 = vand.u32 2147483648, %v442_v61  ;;  %vm452_vm4 = vcmp.eq.f32.partialorder %v442_v61, 0.0 }
 0x18e   : > { %v670_v62 = vpop.eup %669 }
 0x18f   : > { %v444_v63 = vmul.f32 %v670_v62, %v442_v61 }
 0x191   : > { %v445_v0 = vmul.f32 %v670_v62, %v444_v63 }
 0x193   : > { %v446_v1 = vmul.f32 0.5, %v445_v0 }
 0x195   : > { %v447_v2 = vsub.f32 1.5, %v446_v1 }
 0x197   : > { %v448_v3 = vmul.f32 %v670_v62, %v447_v2 }
 0x199   : > { %v449_v4 = vmul.f32 %v448_v3, %v442_v61 }
 0x19b   : > { %v451_v6 = vsel %vm450_vm2, %v442_v61, %v449_v4 }
 0x19c   : > { %v454_v7 = vsel %vm452_vm4, %v453_v5, %v451_v6 }
 0x19d   : > { %456 = vst.msk [vmem:[%s928_s3] sm:$0x1] %vm455_vm3, %v454_v7 }
 0x19e PF: > { %p14_p4 = scmp.ge.s32.totalorder %s842_s24, 6   ;;  %s932_s12 = smov %s761_s13 }
 0x19f   : > { %s933_s13 = smov %s765_s14  ;;  %s934_s14 = smov %s852_s29 }
 0x1a0   : > { %s935_s15 = smov %s842_s24  ;;  %16 = sbr.rel (!%p14_p4) target bundleno = 4 (0x4), region = 83 }
 0x1a5   :  { %468 = vsyncpa [#allocation4], 1 }
 0x1a6   :  { %470 = vsyncpa [#allocation4 + $0x1], 1 }
 0x1a7   :  { %471 = vsyncpa [#allocation6], 1 }

</bundles_post_ra>
